<compile_context>
chip_gen: v7x
topology: tpu7x:2x2x1
jax: 0.10.0
libtpu: 0.0.40
codegen_flags: <defaults>
</compile_context>

<pallas_src>
import functools

import jax
import jax.numpy as jnp
from jax import lax
from jax.experimental import pallas as pl
from jax.experimental.pallas import tpu as pltpu


def _round_up(n, m):
    return ((n + m - 1) // m) * m


def _tpu_caps():
    """Best-effort chip detection: (vmem_capacity_bytes, bf16_eup, kind str)."""
    vmem_cap = 64 << 20          # conservative default (v7x per-TC)
    bf16_eup = False
    kind = ""
    try:
        kind = jax.devices()[0].device_kind.lower()
    except Exception:
        pass
    if "v4" in kind or "v5" in kind:
        vmem_cap, bf16_eup = 128 << 20, False
    elif "v6" in kind:
        vmem_cap, bf16_eup = 128 << 20, True
    elif "v7" in kind:
        vmem_cap, bf16_eup = 64 << 20, True
    try:
        info = pltpu.get_tpu_info()
        cap = getattr(info, "vmem_capacity_bytes", None)
        if cap:
            vmem_cap = int(cap)
    except Exception:
        pass
    return vmem_cap, bf16_eup, kind


def _resident_kernel(x_ref, w1t_ref, b1_ref, w2t_ref, b2_ref, o_ref,
                     *, nblocks, act_dtype):
    """One batch tile; the whole weight stack is VMEM-resident.

    x_ref  : (tb, dp)            VMEM (caller dtype)
    w1t_ref: (nblocks, dp, wp)   bf16 VMEM (W1^T stack, padded)
    b1_ref : (nblocks, 1, wp)    f32 VMEM
    w2t_ref: (nblocks, wp, dp)   bf16 VMEM (W2^T stack, padded)
    b2_ref : (nblocks, 1, dp)    f32 VMEM
    o_ref  : (tb, dp)            VMEM (caller dtype)
    """
    x32 = x_ref[...].astype(jnp.float32)

    def body(k, carry):
        xb = carry.astype(jnp.bfloat16)                       # MXU operand
        z1 = jnp.dot(xb, w1t_ref[k],
                     preferred_element_type=jnp.float32) + b1_ref[k]
        h1 = jnp.tanh(z1.astype(act_dtype))                   # bf16 EUP on v6e/v7x
        z2 = jnp.dot(h1.astype(jnp.bfloat16), w2t_ref[k],
                     preferred_element_type=jnp.float32) + b2_ref[k]
        h2 = jnp.tanh(z2.astype(act_dtype))
        return h2.astype(jnp.float32) + carry                 # residual add in f32

    y = lax.fori_loop(0, nblocks, body, x32, unroll=True)
    o_ref[...] = y.astype(o_ref.dtype)


def _streamed_kernel(x_ref, w1t_ref, b1_ref, w2t_ref, b2_ref, o_ref, *, act_dtype):
    """One (batch-tile, block) grid step; f32 residual carry lives in o_ref."""
    k = pl.program_id(1)

    @pl.when(k == 0)
    def _init():
        o_ref[...] = x_ref[...].astype(jnp.float32)

    x32 = o_ref[...]                                          # f32 residual carry
    xb = x32.astype(jnp.bfloat16)
    z1 = jnp.dot(xb, w1t_ref[0],
                 preferred_element_type=jnp.float32) + b1_ref[0]
    h1 = jnp.tanh(z1.astype(act_dtype))
    z2 = jnp.dot(h1.astype(jnp.bfloat16), w2t_ref[0],
                 preferred_element_type=jnp.float32) + b2_ref[0]
    h2 = jnp.tanh(z2.astype(act_dtype))
    o_ref[...] = h2.astype(jnp.float32) + x32


def prepare_params(w1, b1, w2, b2):
    """One-time parameter prep: transpose, pad to lane-dense dims, cast bf16.

    w1: (nblocks, width, dim_in)   (torch layer1.weight, stacked)
    b1: (nblocks, width)
    w2: (nblocks, dim_in, width)   (torch layer2.weight, stacked)
    b2: (nblocks, dim_in)
    """
    nblocks, width, dim_in = w1.shape
    dp = _round_up(dim_in, 128)   # padded feature dim (lane-dense)
    wp = _round_up(width, 128)    # padded hidden width (lane-dense)

    w1t = jnp.transpose(w1, (0, 2, 1))                        # (nb, dim_in, width)
    w2t = jnp.transpose(w2, (0, 2, 1))                        # (nb, width, dim_in)
    w1t = jnp.pad(w1t, ((0, 0), (0, dp - dim_in), (0, wp - width))
                  ).astype(jnp.bfloat16)                      # (nb, dp, wp)
    w2t = jnp.pad(w2t, ((0, 0), (0, wp - width), (0, dp - dim_in))
                  ).astype(jnp.bfloat16)                      # (nb, wp, dp)
    b1p = jnp.pad(b1, ((0, 0), (0, wp - width))
                  ).astype(jnp.float32)[:, None, :]           # (nb, 1, wp)
    b2p = jnp.pad(b2, ((0, 0), (0, dp - dim_in))
                  ).astype(jnp.float32)[:, None, :]           # (nb, 1, dp)
    # Zero padding is self-consistent: padded hidden units / feature columns
    # stay exactly 0 through tanh and the residual add.
    return w1t, b1p, w2t, b2p, dim_in


def residual_ffnet(x, params, *, batch_tile=None):
    """Run ResidualFeedForwardNet on x of shape (B, dim_in)."""
    w1t, b1p, w2t, b2p, dim_in = params
    nblocks, dp, wp = w1t.shape
    B = x.shape[0]

    vmem_cap, bf16_eup, kind = _tpu_caps()
    is_v7x = "v7" in kind
    act_dtype = jnp.bfloat16 if bf16_eup else jnp.float32

    # Usable-VMEM target (headroom under physical for compiler scratch).
    if is_v7x:
        vmem_target = min(50 << 20, vmem_cap - (12 << 20))
    elif ("v4" in kind) or ("v5" in kind) or ("v6" in kind):
        vmem_target = min(100 << 20, vmem_cap - (16 << 20))
    else:
        vmem_target = min(50 << 20, max(vmem_cap - (12 << 20), 32 << 20))
    vmem_target = max(int(vmem_target), 24 << 20)

    x_item = jnp.dtype(x.dtype).itemsize
    out_dtype_resident = x.dtype
    w_stack_bytes = nblocks * (2 * dp * wp * 2 + (wp + dp) * 4)

    def _budget(tb, resident):
        # in-kernel intermediates (h1 f32 + h1 bf16 + h2 f32 + x_bf):
        act = tb * wp * 4 + tb * wp * 2 + tb * dp * 4 + tb * dp * 2
        if resident:
            io = 2 * tb * dp * x_item \
                + 2 * tb * dp * jnp.dtype(out_dtype_resident).itemsize
            w = 2 * w_stack_bytes            # assume double-buffered weight stack
        else:
            io = 2 * tb * dp * x_item + 2 * tb * dp * 4   # f32 out carries residual
            nbuf = 3 if "v5" in kind else 2
            w = nbuf * (2 * dp * wp * 2 + (wp + dp) * 4)
        return io + w + act

    # Per-generation default batch tile (streamed-weight roofline ratios).
    if batch_tile is None:
        if "v6" in kind:
            tb = 1024
        elif ("v5" in kind) or ("v4" in kind):
            tb = 256
        else:                                 # v7x / unknown
            tb = 512
        tb = min(tb, _round_up(B, 8))
        if is_v7x and B > 8:
            # keep >= 2 batch tiles so both TensorCores get work
            tb = min(tb, _round_up(-(-B // 2), 8))
    else:
        tb = _round_up(batch_tile, 8)
    tb = max(tb, 8)

    resident = _budget(tb, True) <= vmem_target
    while tb > 8 and _budget(tb, resident) > vmem_target:
        tb = max(8, _round_up(tb // 2, 8))
    # TODO(synk): for very wide hidden layers where even tb=8 exceeds the VMEM
    # target, add a hidden-width (wp) tiling axis with a partial-h1 accumulator
    # instead of loading full W1^T / W2^T blocks.

    budget = _budget(tb, resident)
    vmem_limit = int(min(vmem_target, max(int(budget * 1.5), 32 << 20)))
    if budget > vmem_limit:       # pathological fallback: still compile
        vmem_limit = int(min(vmem_cap - (2 << 20), int(budget * 1.1)))

    Bp = _round_up(B, tb)
    xp = jnp.pad(x, ((0, Bp - B), (0, dp - dim_in)))

    if resident:
        kernel = functools.partial(_resident_kernel,
                                   nblocks=nblocks, act_dtype=act_dtype)
        out_padded = pl.pallas_call(
            kernel,
            out_shape=jax.ShapeDtypeStruct((Bp, dp), out_dtype_resident),
            grid_spec=pltpu.PrefetchScalarGridSpec(
                num_scalar_prefetch=0,
                grid=(Bp // tb,),
                in_specs=[
                    pl.BlockSpec((tb, dp), lambda i: (i, 0)),              # x tile
                    pl.BlockSpec((nblocks, dp, wp), lambda i: (0, 0, 0)),  # W1^T stack
                    pl.BlockSpec((nblocks, 1, wp), lambda i: (0, 0, 0)),   # b1 stack
                    pl.BlockSpec((nblocks, wp, dp), lambda i: (0, 0, 0)),  # W2^T stack
                    pl.BlockSpec((nblocks, 1, dp), lambda i: (0, 0, 0)),   # b2 stack
                ],
                out_specs=pl.BlockSpec((tb, dp), lambda i: (i, 0)),
            ),
            compiler_params=pltpu.CompilerParams(
                dimension_semantics=("parallel",),
                vmem_limit_bytes=vmem_limit,
            ),
        )(xp, w1t, b1p, w2t, b2p)
    else:
        kernel = functools.partial(_streamed_kernel, act_dtype=act_dtype)
        w_kw = dict(pipeline_mode=pl.Buffered(3)) if "v5" in kind else {}
        out_padded = pl.pallas_call(
            kernel,
            out_shape=jax.ShapeDtypeStruct((Bp, dp), jnp.float32),
            grid_spec=pltpu.PrefetchScalarGridSpec(
                num_scalar_prefetch=0,
                grid=(Bp // tb, nblocks),
                in_specs=[
                    pl.BlockSpec((tb, dp), lambda i, k: (i, 0)),
                    pl.BlockSpec((1, dp, wp), lambda i, k: (k, 0, 0), **w_kw),
                    pl.BlockSpec((1, 1, wp), lambda i, k: (k, 0, 0)),
                    pl.BlockSpec((1, wp, dp), lambda i, k: (k, 0, 0), **w_kw),
                    pl.BlockSpec((1, 1, dp), lambda i, k: (k, 0, 0)),
                ],
                out_specs=pl.BlockSpec((tb, dp), lambda i, k: (i, 0)),
            ),
            compiler_params=pltpu.CompilerParams(
                dimension_semantics=("parallel", "arbitrary"),
                vmem_limit_bytes=vmem_limit,
            ),
        )(xp, w1t, b1p, w2t, b2p)

    return out_padded[:B, :dim_in].astype(x.dtype)


def _init_linear(key, fan_out, fan_in):
    """Mimic torch.nn.Linear default init (uniform +-1/sqrt(fan_in))."""
    kw, kb = jax.random.split(key)
    bound = 1.0 / jnp.sqrt(fan_in)
    w = jax.random.uniform(kw, (fan_out, fan_in), jnp.float32, -bound, bound)
    b = jax.random.uniform(kb, (fan_out,), jnp.float32, -bound, bound)
    return w, b


def _reference(x, w1, b1, w2, b2):
    """Pure-JAX f32 reference of the torch forward pass."""
    nblocks = w1.shape[0]
    for blk in range(nblocks):
        h1 = jnp.tanh(x @ w1[blk].T + b1[blk])
        h2 = jnp.tanh(h1 @ w2[blk].T + b2[blk])
        x = h2 + x
    return x


if __name__ == "__main__":
    # Small shapes consistent with the module: a batch of feature vectors.
    batch = 8
    dim_in = 32
    block_width = 16
    nblocks = 2

    key = jax.random.PRNGKey(0)
    kx, *kblocks = jax.random.split(key, 1 + nblocks)

    x = jax.random.normal(kx, (batch, dim_in), jnp.float32)

    w1_list, b1_list, w2_list, b2_list = [], [], [], []
    for kb in kblocks:
        k1, k2 = jax.random.split(kb)
        w1b, b1b = _init_linear(k1, block_width, dim_in)   # layer1: dim_in -> width
        w2b, b2b = _init_linear(k2, dim_in, block_width)   # layer2: width -> dim_in
        w1_list.append(w1b); b1_list.append(b1b)
        w2_list.append(w2b); b2_list.append(b2b)

    w1 = jnp.stack(w1_list)  # (nblocks, width, dim_in)
    b1 = jnp.stack(b1_list)  # (nblocks, width)
    w2 = jnp.stack(w2_list)  # (nblocks, dim_in, width)
    b2 = jnp.stack(b2_list)  # (nblocks, dim_in)

    # Parameter prep (transpose/pad/bf16) happens once, outside the call path.
    params = prepare_params(w1, b1, w2, b2)

    out = residual_ffnet(x, params)
    out = jax.block_until_ready(out)

    ref = _reference(x, w1, b1, w2, b2)
    assert out.shape == (batch, dim_in)
    # bf16 matmul operands (+ bf16 tanh on v6e/v7x) with f32 accumulation /
    # residual carry -> slightly loose tolerance.
    assert jnp.allclose(out, ref, atol=5e-2, rtol=5e-2), "mismatch vs JAX reference"

    print("KERNEL_OK")
</pallas_src>

<mosaic_0001>
module attributes {stable_mosaic.version = 11 : i64} {
  func.func @_resident_kernel(%arg0: i32, %arg1: memref<8x128xf32, #tpu.memory_space<vmem>>, %arg2: memref<2x128x128xbf16, #tpu.memory_space<vmem>>, %arg3: memref<2x1x128xf32, #tpu.memory_space<vmem>>, %arg4: memref<2x128x128xbf16, #tpu.memory_space<vmem>>, %arg5: memref<2x1x128xf32, #tpu.memory_space<vmem>>, %arg6: memref<8x128xf32, #tpu.memory_space<vmem>>) attributes {dimension_semantics = [#tpu.dimension_semantics<parallel>], iteration_bounds = array<i64: 1>, scalar_prefetch = 0 : i64, scratch_operands = 0 : i64, tpu.core_type = #tpu.core_type<tc>, window_params = [{transform_indices = @transform_0, window_bounds = array<i64: 8, 128>}, {pipeline_mode = #tpu.pipeline_mode<synchronous>, transform_indices = @transform_1, window_bounds = array<i64: 2, 128, 128>}, {pipeline_mode = #tpu.pipeline_mode<synchronous>, transform_indices = @transform_2, window_bounds = array<i64: 2, 1, 128>}, {pipeline_mode = #tpu.pipeline_mode<synchronous>, transform_indices = @transform_3, window_bounds = array<i64: 2, 128, 128>}, {pipeline_mode = #tpu.pipeline_mode<synchronous>, transform_indices = @transform_4, window_bounds = array<i64: 2, 1, 128>}, {transform_indices = @transform_5, window_bounds = array<i64: 8, 128>}]} {
    %c0 = arith.constant 0 : index
    %c0_0 = arith.constant 0 : index
    %0 = vector.load %arg1[%c0, %c0_0] : memref<8x128xf32, #tpu.memory_space<vmem>>, vector<8x128xf32>
    %c0_i32 = arith.constant 0 : i32
    %1 = arith.truncf %0 : vector<8x128xf32> to vector<8x128xbf16>
    %2 = arith.index_cast %c0_i32 : i32 to index
    %c0_1 = arith.constant 0 : index
    %c0_2 = arith.constant 0 : index
    %3 = vector.load %arg2[%2, %c0_1, %c0_2] : memref<2x128x128xbf16, #tpu.memory_space<vmem>>, vector<1x128x128xbf16>
    %4 = vector.shape_cast %3 : vector<1x128x128xbf16> to vector<128x128xbf16>
    %cst = arith.constant dense<0.000000e+00> : vector<8x128xf32>
    %5 = tpu.matmul %1, %4, %cst {dimension_numbers = #tpu.dot_dimension_numbers<[1], [0], [0], [1], [0, 0, 1, 1], [], []>} : vector<8x128xbf16>, vector<128x128xbf16>, vector<8x128xf32> -> vector<8x128xf32>
    %6 = arith.index_cast %c0_i32 : i32 to index
    %c0_3 = arith.constant 0 : index
    %c0_4 = arith.constant 0 : index
    %7 = vector.load %arg3[%6, %c0_3, %c0_4] : memref<2x1x128xf32, #tpu.memory_space<vmem>>, vector<1x1x128xf32>
    %8 = vector.shape_cast %7 : vector<1x1x128xf32> to vector<1x128xf32>
    %9 = vector.broadcast %8 : vector<1x128xf32> to vector<8x128xf32>
    %10 = arith.addf %5, %9 : vector<8x128xf32>
    %11 = math.tanh %10 : vector<8x128xf32>
    %12 = arith.truncf %11 : vector<8x128xf32> to vector<8x128xbf16>
    %13 = arith.index_cast %c0_i32 : i32 to index
    %c0_5 = arith.constant 0 : index
    %c0_6 = arith.constant 0 : index
    %14 = vector.load %arg4[%13, %c0_5, %c0_6] : memref<2x128x128xbf16, #tpu.memory_space<vmem>>, vector<1x128x128xbf16>
    %15 = vector.shape_cast %14 : vector<1x128x128xbf16> to vector<128x128xbf16>
    %cst_7 = arith.constant dense<0.000000e+00> : vector<8x128xf32>
    %16 = tpu.matmul %12, %15, %cst_7 {dimension_numbers = #tpu.dot_dimension_numbers<[1], [0], [0], [1], [0, 0, 1, 1], [], []>} : vector<8x128xbf16>, vector<128x128xbf16>, vector<8x128xf32> -> vector<8x128xf32>
    %17 = arith.index_cast %c0_i32 : i32 to index
    %c0_8 = arith.constant 0 : index
    %c0_9 = arith.constant 0 : index
    %18 = vector.load %arg5[%17, %c0_8, %c0_9] : memref<2x1x128xf32, #tpu.memory_space<vmem>>, vector<1x1x128xf32>
    %19 = vector.shape_cast %18 : vector<1x1x128xf32> to vector<1x128xf32>
    %20 = vector.broadcast %19 : vector<1x128xf32> to vector<8x128xf32>
    %21 = arith.addf %16, %20 : vector<8x128xf32>
    %22 = math.tanh %21 : vector<8x128xf32>
    %23 = arith.addf %22, %0 : vector<8x128xf32>
    %c1_i32 = arith.constant 1 : i32
    %24 = arith.truncf %23 : vector<8x128xf32> to vector<8x128xbf16>
    %25 = arith.index_cast %c1_i32 : i32 to index
    %c0_10 = arith.constant 0 : index
    %c0_11 = arith.constant 0 : index
    %26 = vector.load %arg2[%25, %c0_10, %c0_11] : memref<2x128x128xbf16, #tpu.memory_space<vmem>>, vector<1x128x128xbf16>
    %27 = vector.shape_cast %26 : vector<1x128x128xbf16> to vector<128x128xbf16>
    %cst_12 = arith.constant dense<0.000000e+00> : vector<8x128xf32>
    %28 = tpu.matmul %24, %27, %cst_12 {dimension_numbers = #tpu.dot_dimension_numbers<[1], [0], [0], [1], [0, 0, 1, 1], [], []>} : vector<8x128xbf16>, vector<128x128xbf16>, vector<8x128xf32> -> vector<8x128xf32>
    %29 = arith.index_cast %c1_i32 : i32 to index
    %c0_13 = arith.constant 0 : index
    %c0_14 = arith.constant 0 : index
    %30 = vector.load %arg3[%29, %c0_13, %c0_14] : memref<2x1x128xf32, #tpu.memory_space<vmem>>, vector<1x1x128xf32>
    %31 = vector.shape_cast %30 : vector<1x1x128xf32> to vector<1x128xf32>
    %32 = vector.broadcast %31 : vector<1x128xf32> to vector<8x128xf32>
    %33 = arith.addf %28, %32 : vector<8x128xf32>
    %34 = math.tanh %33 : vector<8x128xf32>
    %35 = arith.truncf %34 : vector<8x128xf32> to vector<8x128xbf16>
    %36 = arith.index_cast %c1_i32 : i32 to index
    %c0_15 = arith.constant 0 : index
    %c0_16 = arith.constant 0 : index
    %37 = vector.load %arg4[%36, %c0_15, %c0_16] : memref<2x128x128xbf16, #tpu.memory_space<vmem>>, vector<1x128x128xbf16>
    %38 = vector.shape_cast %37 : vector<1x128x128xbf16> to vector<128x128xbf16>
    %cst_17 = arith.constant dense<0.000000e+00> : vector<8x128xf32>
    %39 = tpu.matmul %35, %38, %cst_17 {dimension_numbers = #tpu.dot_dimension_numbers<[1], [0], [0], [1], [0, 0, 1, 1], [], []>} : vector<8x128xbf16>, vector<128x128xbf16>, vector<8x128xf32> -> vector<8x128xf32>
    %40 = arith.index_cast %c1_i32 : i32 to index
    %c0_18 = arith.constant 0 : index
    %c0_19 = arith.constant 0 : index
    %41 = vector.load %arg5[%40, %c0_18, %c0_19] : memref<2x1x128xf32, #tpu.memory_space<vmem>>, vector<1x1x128xf32>
    %42 = vector.shape_cast %41 : vector<1x1x128xf32> to vector<1x128xf32>
    %43 = vector.broadcast %42 : vector<1x128xf32> to vector<8x128xf32>
    %44 = arith.addf %39, %43 : vector<8x128xf32>
    %45 = math.tanh %44 : vector<8x128xf32>
    %46 = arith.addf %45, %23 : vector<8x128xf32>
    %c2_i32 = arith.constant 2 : i32
    %c0_20 = arith.constant 0 : index
    %c0_21 = arith.constant 0 : index
    %47 = vector.load %arg6[%c0_20, %c0_21] : memref<8x128xf32, #tpu.memory_space<vmem>>, vector<8x128xf32>
    tpu.vector_store %arg6[%c0_20, %c0_21], %46 {strides = array<i32>} : memref<8x128xf32, #tpu.memory_space<vmem>>, vector<8x128xf32>,
    return
  }
  func.func @transform_0(%arg0: i32) -> (i32, i32) {
    %c0_i32 = arith.constant 0 : i32
    %c0_i32_0 = arith.constant 0 : i32
    return %arg0, %c0_i32 : i32, i32
  }
  func.func @transform_1(%arg0: i32) -> (i32, i32, i32) {
    %c0_i32 = arith.constant 0 : i32
    %c0_i32_0 = arith.constant 0 : i32
    %c0_i32_1 = arith.constant 0 : i32
    %c0_i32_2 = arith.constant 0 : i32
    return %c0_i32, %c0_i32_0, %c0_i32_1 : i32, i32, i32
  }
  func.func @transform_2(%arg0: i32) -> (i32, i32, i32) {
    %c0_i32 = arith.constant 0 : i32
    %c0_i32_0 = arith.constant 0 : i32
    %c0_i32_1 = arith.constant 0 : i32
    %c0_i32_2 = arith.constant 0 : i32
    return %c0_i32, %c0_i32_0, %c0_i32_1 : i32, i32, i32
  }
  func.func @transform_3(%arg0: i32) -> (i32, i32, i32) {
    %c0_i32 = arith.constant 0 : i32
    %c0_i32_0 = arith.constant 0 : i32
    %c0_i32_1 = arith.constant 0 : i32
    %c0_i32_2 = arith.constant 0 : i32
    return %c0_i32, %c0_i32_0, %c0_i32_1 : i32, i32, i32
  }
  func.func @transform_4(%arg0: i32) -> (i32, i32, i32) {
    %c0_i32 = arith.constant 0 : i32
    %c0_i32_0 = arith.constant 0 : i32
    %c0_i32_1 = arith.constant 0 : i32
    %c0_i32_2 = arith.constant 0 : i32
    return %c0_i32, %c0_i32_0, %c0_i32_1 : i32, i32, i32
  }
  func.func @transform_5(%arg0: i32) -> (i32, i32) {
    %c0_i32 = arith.constant 0 : i32
    %c0_i32_0 = arith.constant 0 : i32
    return %arg0, %c0_i32 : i32, i32
  }
}

</mosaic_0001>

<bundles_post_ra>
// kernel: tpu_custom_call.1
= control target key start
LH: loop header
LB: loop body
LE: loop exit
PB: predicated region body
PF: predicated region fallthrough
CT: control target
= control target key end

     0   :  { %10 = vsyncpa [#allocation3], 0  ;;  %s982_s0 = inlined_call_operand.hbm [shape: f32[8,128], index: 0, kind: input, shape index: {}]   ;;  %s983_s1 = inlined_call_operand.hbm [shape: bf16[2,128,128], index: 1, kind: input, shape index: {}]   ;;  %s984_s2 = inlined_call_operand.vmem [shape: f32[2,1,128], index: 2, kind: input, shape index: {}]   ;;  %s985_s3 = inlined_call_operand.hbm [shape: bf16[2,128,128], index: 3, kind: input, shape index: {}]   ;;  %s986_s4 = inlined_call_operand.vmem [shape: f32[2,1,128], index: 4, kind: input, shape index: {}]   ;;  %s987_s5 = inlined_call_operand.hbm [shape: f32[8,128], index: 5, kind: output, shape index: {}]  }
   0x1   :  { %11 = vsyncpa [#allocation6], 0 }
   0x2   :  { %12 = vsyncpa [#allocation4], 0  ;;  %s833_s18 = smov [#allocation5]   ;;  %s739_s22 = scalar_lea.hbm %s983_s1, 2048 }
   0x3   :  { %s28_s19 = sshll.u32 %s833_s18, 4  ;;  %p740_p0 = scmp.ne.s32.totalorder %s983_s1, %s739_s22  ;;  %s29_s19 = int_to_ptr.vmem [resolvable:$true] %s28_s19 }
   0x4   :  { %p743_p1 = scmp.lt.u32.totalorder %s739_s22, %s983_s1 }
   0x6   :  { %p745_p2 = pnand %p743_p1, %p740_p0 }
   0x8   :  { %748 = shalt.err (!%p745_p2)
}
   0x9   :  { %s749_s27 = scalar_lea.vmem %s29_s19, 2048  ;;  %p754_p4 = scmp.lt.s32.totalorder %s29_s19, %s29_s19 }
   0xa   :  { %p750_p3 = scmp.ne.s32.totalorder %s29_s19, %s749_s27  ;;  %p755_p5 = scmp.lt.s32.totalorder %s749_s27, %s749_s27 }
   0xc   :  { %p756_p6 = por %p755_p5, %p754_p4 }
   0xe   :  { %p757_p7 = pnand %p756_p6, %p750_p3 }
  0x10   :  { %760 = shalt.err (!%p757_p7)
}
  0x11   :  { %s834_s28 = smov 64   ;;  %s835_s29 = smov 4  }
  0x12   :  { %34 = dma.hbm_to_vmem [thread:$0]  %s983_s1, 2048, %s29_s19, [#allocation6], %s834_s28, %s834_s28, %s835_s29  }
  0x13   :  { %s836_s7 = smov [#allocation2]   ;;  %s837_s9 = smov [#allocation7]  }
  0x14   :  { %s19_s8 = sshll.u32 %s836_s7, 4  ;;  %s42_s10 = sshll.u32 %s837_s9, 4  ;;  %s20_s8 = int_to_ptr.vmem [resolvable:$true] %s19_s8  ;;  %s43_s10 = int_to_ptr.vmem [resolvable:$true] %s42_s10 }
  0x15   :  { %s761_s13 = scalar_lea.hbm %s982_s0, 128 }
  0x16   :  { %p762_p8 = scmp.ne.s32.totalorder %s982_s0, %s761_s13  ;;  %p765_p9 = scmp.lt.u32.totalorder %s761_s13, %s982_s0 }
  0x18   :  { %p767_p10 = pnand %p765_p9, %p762_p8 }
  0x1a   :  { %770 = shalt.err (!%p767_p10)
}
  0x1b   :  { %s771_s1 = scalar_lea.vmem %s20_s8, 128  ;;  %p776_p12 = scmp.lt.s32.totalorder %s20_s8, %s20_s8 }
  0x1c   :  { %p772_p11 = scmp.ne.s32.totalorder %s20_s8, %s771_s1  ;;  %p777_p13 = scmp.lt.s32.totalorder %s771_s1, %s771_s1 }
  0x1e   :  { %p778_p0 = por %p777_p13, %p776_p12 }
  0x20   :  { %p779_p1 = pnand %p778_p0, %p772_p11 }
  0x22   :  { %782 = shalt.err (!%p779_p1)
}
  0x23   :  { %22 = dma.hbm_to_vmem [thread:$0]  %s982_s0, 128, %s20_s8, [#allocation3]  }
  0x24   :  { %s783_s22 = scalar_lea.hbm %s985_s3, 2048 }
  0x25   :  { %p784_p2 = scmp.ne.s32.totalorder %s985_s3, %s783_s22  ;;  %p787_p3 = scmp.lt.u32.totalorder %s783_s22, %s985_s3 }
  0x27   :  { %p789_p4 = pnand %p787_p3, %p784_p2 }
  0x29   :  { %792 = shalt.err (!%p789_p4)
}
  0x2a   :  { %s793_s27 = scalar_lea.vmem %s43_s10, 2048  ;;  %p798_p6 = scmp.lt.s32.totalorder %s43_s10, %s43_s10 }
  0x2b   :  { %p794_p5 = scmp.ne.s32.totalorder %s43_s10, %s793_s27  ;;  %p799_p7 = scmp.lt.s32.totalorder %s793_s27, %s793_s27 }
  0x2d   :  { %p800_p8 = por %p799_p7, %p798_p6 }
  0x2f   :  { %p801_p9 = pnand %p800_p8, %p794_p5 }
  0x31   :  { %804 = shalt.err (!%p801_p9)
}
  0x32   :  { %48 = dma.hbm_to_vmem [thread:$0]  %s985_s3, 2048, %s43_s10, [#allocation6], %s834_s28, %s834_s28, %s835_s29  }
  0x33   :  { %827 = dma.done.wait [#allocation3], 128  }
  0x34   :  { %828 = vsyncadd [#allocation3], 4294967168 }
  0x35   :  { %829 = dma.done.wait [#allocation6], 4096  }
  0x36   :  { %830 = vsyncadd [#allocation6], 4294963200  ;;  %v838_v0 = vmov 0.0   ;;  %vm839_vm0 = vmmov 0   ;;  %v699_v1 = vld [vmem:[#allocation5] sm:$0xff]   ;;  %v700_v2 = vld [vmem:[#allocation5 + $0x8] sm:$0xff]  }
  0x37   :  { %611 = vmatprep.subr.bf16.mxu0 %v838_v0  ;;  %627 = vmatprep.mubr.msk.bf16.mxu0 %vm839_vm0, %v838_v0  ;;  %v701_v3 = vld [vmem:[#allocation5 + $0x10] sm:$0xff]   ;;  %v707_v4 = vld [vmem:[#allocation7] sm:$0xff]   ;;  %v702_v5 = vld [vmem:[#allocation5 + $0x18] sm:$0xff]  }
  0x38   :  { %631 = vmatprep.subr.bf16.mxu1 %v838_v0  ;;  %647 = vmatprep.mubr.msk.bf16.mxu1 %vm839_vm0, %v838_v0  ;;  %v708_v6 = vld [vmem:[#allocation7 + $0x8] sm:$0xff]   ;;  %v703_v7 = vld [vmem:[#allocation5 + $0x20] sm:$0xff]   ;;  %v709_v8 = vld [vmem:[#allocation7 + $0x10] sm:$0xff]  }
  0x39   :  { %612 = vmatpush3.bf16.msra.mxu0 %v699_v1  ;;  %632 = vmatpush3.bf16.msra.mxu1 %v707_v4  ;;  %v704_v9 = vld [vmem:[#allocation5 + $0x28] sm:$0xff]   ;;  %v710_v10 = vld [vmem:[#allocation7 + $0x18] sm:$0xff]   ;;  %v705_v11 = vld [vmem:[#allocation5 + $0x30] sm:$0xff]  }
  0x3a   :  { %613 = vmatprep.subr.bf16.mxu0 %v838_v0  ;;  %633 = vmatprep.subr.bf16.mxu1 %v838_v0  ;;  %v706_v12 = vld [vmem:[#allocation5 + $0x38] sm:$0xff]   ;;  %v711_v15 = vld [vmem:[#allocation7 + $0x20] sm:$0xff]   ;;  %v712_v16 = vld [vmem:[#allocation7 + $0x28] sm:$0xff]  }
  0x3b   :  { %v929_v13 = vld [vmem:[#allocation2] sm:$0xff]  ;;  %v713_v17 = vld [vmem:[#allocation7 + $0x30] sm:$0xff]   ;;  %v715_v19 = vld [vmem:[#allocation5 + $0x40] sm:$0xff]  }
  0x3c   :  { %v62_v14 = vpack.c.bf16 %v929_v13, %v929_v13  ;;  %v714_v18 = vld [vmem:[#allocation7 + $0x38] sm:$0xff]   ;;  %v716_v20 = vld [vmem:[#allocation5 + $0x48] sm:$0xff]   ;;  %v717_v21 = vld [vmem:[#allocation5 + $0x50] sm:$0xff]  }
  0x3d   :  { %614 = vmatpush3.bf16.msra.mxu0 %v700_v2  ;;  %634 = vmatpush3.bf16.msra.mxu1 %v708_v6  ;;  %v718_v22 = vld [vmem:[#allocation5 + $0x58] sm:$0xff]   ;;  %v719_v31 = vld [vmem:[#allocation5 + $0x60] sm:$0xff]   ;;  %v720_v32 = vld [vmem:[#allocation5 + $0x68] sm:$0xff]  }
  0x3e   :  { %615 = vmatprep.subr.bf16.mxu0 %v838_v0  ;;  %635 = vmatprep.subr.bf16.mxu1 %v838_v0  ;;  %v537_v23 = vld [vmem:[%s984_s2] ss:$0 sm:$0xff]  ;;  %v721_v33 = vld [vmem:[#allocation5 + $0x70] sm:$0xff]   ;;  %v723_v35 = vld [vmem:[#allocation7 + $0x40] sm:$0xff]  }
  0x3f   :  { %v722_v34 = vld [vmem:[#allocation5 + $0x78] sm:$0xff]   ;;  %v724_v36 = vld [vmem:[#allocation7 + $0x48] sm:$0xff]   ;;  %v725_v37 = vld [vmem:[#allocation7 + $0x50] sm:$0xff]  }
  0x40   :  { %v726_v38 = vld [vmem:[#allocation7 + $0x58] sm:$0xff]   ;;  %v727_v48 = vld [vmem:[#allocation7 + $0x60] sm:$0xff]   ;;  %v728_v49 = vld [vmem:[#allocation7 + $0x68] sm:$0xff]  }
  0x41   :  { %616 = vmatpush3.bf16.msra.mxu0 %v701_v3  ;;  %636 = vmatpush3.bf16.msra.mxu1 %v709_v8  ;;  %v546_v39 = vld [vmem:[%s986_s4] ss:$0 sm:$0xff]  ;;  %v729_v50 = vld [vmem:[#allocation7 + $0x70] sm:$0xff]   ;;  %v556_v52 = vld [vmem:[%s984_s2 + $0x1] ss:$0 sm:$0xff]  ;;  %s840_s2 = smov [#allocation8]  }
  0x42   :  { %617 = vmatprep.subr.bf16.mxu0 %v838_v0  ;;  %637 = vmatprep.subr.bf16.mxu1 %v838_v0  ;;  %v730_v51 = vld [vmem:[#allocation7 + $0x78] sm:$0xff]   ;;  %s527_s11 = sshll.u32 %s840_s2, 4  ;;  %s528_s11 = int_to_ptr.vmem [resolvable:$true] %s527_s11 }
  0x43   :  { %v566_v60 = vld [vmem:[%s986_s4 + $0x1] ss:$0 sm:$0xff]  ;;  %s805_s12 = scalar_lea.vmem %s528_s11, 128  ;;  %p810_p11 = scmp.lt.s32.totalorder %s528_s11, %s528_s11 }
  0x44   :  { %p806_p10 = scmp.ne.s32.totalorder %s528_s11, %s805_s12  ;;  %p811_p12 = scmp.lt.s32.totalorder %s805_s12, %s805_s12 }
  0x45   :  { %618 = vmatpush3.bf16.msra.mxu0 %v702_v5  ;;  %638 = vmatpush3.bf16.msra.mxu1 %v710_v10 }
  0x46   :  { %619 = vmatprep.subr.bf16.mxu0 %v838_v0  ;;  %639 = vmatprep.subr.bf16.mxu1 %v838_v0  ;;  %p812_p13 = por %p811_p12, %p810_p11 }
  0x48   :  { %p813_p0 = pnand %p812_p13, %p806_p10 }
  0x49   :  { %620 = vmatpush3.bf16.msra.mxu0 %v703_v7  ;;  %640 = vmatpush3.bf16.msra.mxu1 %v711_v15 }
  0x4a   :  { %621 = vmatprep.subr.bf16.mxu0 %v838_v0  ;;  %641 = vmatprep.subr.bf16.mxu1 %v838_v0 }
  0x4d   :  { %622 = vmatpush3.bf16.msra.mxu0 %v704_v9  ;;  %642 = vmatpush3.bf16.msra.mxu1 %v712_v16 }
  0x4e   :  { %623 = vmatprep.subr.bf16.mxu0 %v838_v0  ;;  %643 = vmatprep.subr.bf16.mxu1 %v838_v0 }
  0x51   :  { %624 = vmatpush3.bf16.msra.mxu0 %v705_v11  ;;  %644 = vmatpush3.bf16.msra.mxu1 %v713_v17 }
  0x52   :  { %625 = vmatprep.subr.bf16.mxu0 %v838_v0  ;;  %645 = vmatprep.subr.bf16.mxu1 %v838_v0 }
  0x55   :  { %626 = vmatpush3.bf16.msra.mxu0 %v706_v12  ;;  %646 = vmatpush3.bf16.msra.mxu1 %v714_v18 }
  0x56   :  { %651 = vmatprep.subr.bf16.mxu0 %v838_v0  ;;  %671 = vmatprep.subr.bf16.mxu1 %v838_v0 }
  0x58   :  { %628 = vmatmul.mubr.bf16.vlgmr.msra.gmra.mrb[0].mxu0 %v62_v14 }
  0x59   :  { %667 = vmatprep.mubr.msk.bf16.mxu0 %vm839_vm0, %v838_v0  ;;  %652 = vmatpush3.bf16.msra.mxu0 %v715_v19 }
  0x5a   :  { %653 = vmatprep.subr.bf16.mxu0 %v838_v0 }
  0x5d   :  { %654 = vmatpush3.bf16.msra.mxu0 %v716_v20 }
  0x5e   :  { %655 = vmatprep.subr.bf16.mxu0 %v838_v0 }
  0x61   :  { %656 = vmatpush3.bf16.msra.mxu0 %v717_v21 }
  0x62   :  { %657 = vmatprep.subr.bf16.mxu0 %v838_v0 }
  0x65   :  { %658 = vmatpush3.bf16.msra.mxu0 %v718_v22 }
  0x66   :  { %659 = vmatprep.subr.bf16.mxu0 %v838_v0 }
  0x69   :  { %660 = vmatpush3.bf16.msra.mxu0 %v719_v31 }
  0x6a   :  { %661 = vmatprep.subr.bf16.mxu0 %v838_v0 }
  0x6d   :  { %662 = vmatpush3.bf16.msra.mxu0 %v720_v32 }
  0x6e   :  { %663 = vmatprep.subr.bf16.mxu0 %v838_v0 }
  0x71   :  { %664 = vmatpush3.bf16.msra.mxu0 %v721_v33 }
  0x72   :  { %665 = vmatprep.subr.bf16.mxu0 %v838_v0 }
  0x75   :  { %666 = vmatpush3.bf16.msra.mxu0 %v722_v34 }
 0x12b   :  { %v168_v24 = vpop.f32.mrb[0].mxu0 }
 0x12c   :  { %v169_v25 = vadd.f32 %v537_v23, %v168_v24  ;;  %v629_v26 = vpop.f32.mrb[1].mxu0 }
 0x12d   :  { %v171_v27 = vpop.f32.mrb[2].mxu0 }
 0x12e   :  { %731 = vtanh.f32 %v169_v25  ;;  %v630_v28 = vpop.f32.mrb[3].mxu0 }
 0x138   :  { %v732_v29 = vpop.eup %731 }
 0x139   :  { %v175_v30 = vpack.c.bf16 %v732_v29, %v732_v29 }
 0x13b   :  { %648 = vmatmul.mubr.bf16.vlgmr.msra.gmra.mrb[0].mxu1 %v175_v30 }
 0x13c   :  { %687 = vmatprep.mubr.msk.bf16.mxu1 %vm839_vm0, %v838_v0  ;;  %672 = vmatpush3.bf16.msra.mxu1 %v723_v35 }
 0x13d   :  { %673 = vmatprep.subr.bf16.mxu1 %v838_v0 }
 0x140   :  { %674 = vmatpush3.bf16.msra.mxu1 %v724_v36 }
 0x141   :  { %675 = vmatprep.subr.bf16.mxu1 %v838_v0 }
 0x144   :  { %676 = vmatpush3.bf16.msra.mxu1 %v725_v37 }
 0x145   :  { %677 = vmatprep.subr.bf16.mxu1 %v838_v0 }
 0x148   :  { %678 = vmatpush3.bf16.msra.mxu1 %v726_v38 }
 0x149   :  { %679 = vmatprep.subr.bf16.mxu1 %v838_v0 }
 0x14c   :  { %680 = vmatpush3.bf16.msra.mxu1 %v727_v48 }
 0x14d   :  { %681 = vmatprep.subr.bf16.mxu1 %v838_v0 }
 0x150   :  { %682 = vmatpush3.bf16.msra.mxu1 %v728_v49 }
 0x151   :  { %683 = vmatprep.subr.bf16.mxu1 %v838_v0 }
 0x154   :  { %684 = vmatpush3.bf16.msra.mxu1 %v729_v50 }
 0x155   :  { %685 = vmatprep.subr.bf16.mxu1 %v838_v0 }
 0x158   :  { %686 = vmatpush3.bf16.msra.mxu1 %v730_v51 }
 0x20e   :  { %v281_v40 = vpop.f32.mrb[0].mxu1 }
 0x20f   :  { %v282_v41 = vadd.f32 %v546_v39, %v281_v40  ;;  %v649_v42 = vpop.f32.mrb[1].mxu1 }
 0x210   :  { %v284_v43 = vpop.f32.mrb[2].mxu1 }
 0x211   :  { %733 = vtanh.f32 %v282_v41  ;;  %v650_v44 = vpop.f32.mrb[3].mxu1 }
 0x21b   :  { %v734_v45 = vpop.eup %733 }
 0x21c   :  { %v288_v46 = vadd.f32 %v734_v45, %v929_v13 }
 0x21e   :  { %v289_v47 = vpack.c.bf16 %v288_v46, %v288_v46 }
 0x220   :  { %668 = vmatmul.mubr.bf16.vlgmr.msra.gmra.mrb[4].mxu0 %v289_v47 }
 0x2f3   :  { %v397_v53 = vpop.f32.mrb[4].mxu0 }
 0x2f4   :  { %v398_v54 = vadd.f32 %v556_v52, %v397_v53  ;;  %v669_v55 = vpop.f32.mrb[5].mxu0 }
 0x2f5   :  { %v400_v56 = vpop.f32.mrb[6].mxu0 }
 0x2f6   :  { %735 = vtanh.f32 %v398_v54  ;;  %v670_v57 = vpop.f32.mrb[7].mxu0 }
 0x300   :  { %v736_v58 = vpop.eup %735 }
 0x301   :  { %v404_v59 = vpack.c.bf16 %v736_v58, %v736_v58 }
 0x303   :  { %688 = vmatmul.mubr.bf16.vlgmr.msra.gmra.mrb[4].mxu1 %v404_v59 }
 0x3d6   :  { %v512_v61 = vpop.f32.mrb[4].mxu1 }
 0x3d7   :  { %v513_v62 = vadd.f32 %v566_v60, %v512_v61  ;;  %v689_v63 = vpop.f32.mrb[5].mxu1 }
 0x3d8   :  { %v515_v0 = vpop.f32.mrb[6].mxu1 }
 0x3d9   :  { %737 = vtanh.f32 %v513_v62  ;;  %v690_v1 = vpop.f32.mrb[7].mxu1 }
 0x3e3   :  { %v738_v2 = vpop.eup %737 }
 0x3e4   :  { %v519_v3 = vadd.f32 %v738_v2, %v288_v46 }
 0x3e6   :  { %520 = vst [vmem:[#allocation8] sm:$0xff] %v519_v3 }
 0x3e7   :  { %816 = shalt.err (!%p813_p0)
}
 0x3e8   :  { %s817_s14 = scalar_lea.hbm %s987_s5, 128 }
 0x3e9   :  { %p818_p1 = scmp.ne.s32.totalorder %s987_s5, %s817_s14  ;;  %p821_p2 = scmp.lt.u32.totalorder %s817_s14, %s987_s5 }
 0x3eb   :  { %p823_p3 = pnand %p821_p2, %p818_p1 }
 0x3ed   :  { %826 = shalt.err (!%p823_p3)
}
 0x3ee   :  { %530 = dma.vmem_to_hbm [thread:$0]  %s528_s11, 128, %s987_s5, [#allocation4]  }
 0x3ef   :  { %831 = dma.done.wait [#allocation4], 128  }
 0x3f0   :  { %832 = vsyncadd [#allocation4], 4294967168 }
 0x3f1   :  { %534 = vsyncpa [#allocation3], 1 }
 0x3f2   :  { %535 = vsyncpa [#allocation6], 1 }
 0x3f3   :  { %536 = vsyncpa [#allocation4], 1 }

</bundles_post_ra>
